<compile_context>
chip_gen: v7x
topology: tpu7x:2x2x1
jax: 0.10.0
libtpu: 0.0.40
codegen_flags: <defaults>
</compile_context>

<pallas_src>
import functools

import jax
import jax.numpy as jnp
from jax.experimental import pallas as pl
from jax.experimental.pallas import tpu as pltpu


def _round_up(x, m):
    return ((x + m - 1) // m) * m


# ----------------------------------------------------------------------------
# Parameter packing: one contiguous (rows, lane_width) f32 buffer, every array
# starting at an 8-aligned sublane offset, lane offset 0 (so all in-kernel
# slices are layout-clean static windows).
# ----------------------------------------------------------------------------
def pack_params(params, n_act):
    wf = params["wf"]
    entries = [
        ("w1", params["w1"]), ("b1", params["b1"]),
        ("w2", params["w2"]), ("b2", params["b2"]),
        ("wf_act", wf[:n_act]), ("wf_feat", wf[n_act:]), ("bf", params["bf"]),
        ("wi1", params["wi1"]), ("bi1", params["bi1"]),
        ("wi2", params["wi2"]), ("bi2", params["bi2"]),
        ("wi3", params["wi3"]), ("bi3", params["bi3"]),
    ]
    lane_width = _round_up(max(a.shape[1] for _, a in entries), 128)

    offs = {}
    blocks = []
    row = 0
    for name, arr in entries:
        r, c = arr.shape
        offs[name] = (row, r, c)
        padded = jnp.zeros((_round_up(r, 8), lane_width), jnp.float32)
        padded = padded.at[:r, :c].set(arr.astype(jnp.float32))
        blocks.append(padded)
        row += _round_up(r, 8)
    packed = jnp.concatenate(blocks, axis=0)
    return packed, offs


# ----------------------------------------------------------------------------
# Fused kernel: shared-weight 2-layer GCN feature extractor (both graphs in one
# stacked pass, mean-pool folded into a pooled-adjacency matvec), ForwardModel
# (weight-row gather for the action one-hot), and the 3-layer InverseModel MLP.
# ----------------------------------------------------------------------------
def _icm_kernel(offs, hidden_dim, n_act, pad_lanes,
                act_ref,                                   # scalar-prefetch (SMEM)
                w_ref, x_ref, a_ref, pooled_ref,           # inputs (VMEM)
                out_ref):                                  # single (1, out_w) output
    f32 = jnp.float32
    H = hidden_dim

    def wsl(name):
        o, r, c = offs[name]
        return w_ref[o:o + r, 0:c]

    # --- FeatureExtractor on the stacked graph pair [2N, F] ------------------
    h = jnp.dot(x_ref[...], wsl("w1"), preferred_element_type=f32)        # (2N, H)
    h = jnp.dot(a_ref[...], h, preferred_element_type=f32) + wsl("b1")    # (2N, H)
    # ELU; clamp exp argument so the unselected branch never overflows.
    h = jnp.where(h > 0, h, jnp.exp(jnp.minimum(h, 0.0)) - 1.0)
    # 2nd GCN layer fused with global_mean_pool:
    #   mean_i (A @ (h W2))[i,:] == mean(A, axis=0) @ (h W2)
    h = jnp.dot(h, wsl("w2"), preferred_element_type=f32)                 # (2N, H)
    f = jnp.dot(pooled_ref[...], h, preferred_element_type=f32) + wsl("b2")  # (2, H)
    f_s = f[0:1, :]
    f_ns = f[1:2, :]

    # --- ForwardModel: Linear(cat(one_hot(a), f_s)) == Wf_act[a] + f_s @ Wf_feat + bf
    act = act_ref[0]
    sel = jax.lax.broadcasted_iota(jnp.int32, (n_act, H), 0) == act
    act_row = jnp.sum(jnp.where(sel, wsl("wf_act"), 0.0),
                      axis=0, keepdims=True)                              # (1, H)
    ns_hat = (act_row
              + jnp.dot(f_s, wsl("wf_feat"), preferred_element_type=f32)
              + wsl("bf"))                                                # (1, H)

    # --- InverseModel: Linear(2H,128)->ReLU->Linear(128,128)->ReLU->Linear(128,n_act)
    o, _, c = offs["wi1"]                     # split at H (8-aligned) avoids a concat
    wi1_a = w_ref[o:o + H, 0:c]
    wi1_b = w_ref[o + H:o + 2 * H, 0:c]
    z = (jnp.dot(f_s, wi1_a, preferred_element_type=f32)
         + jnp.dot(f_ns, wi1_b, preferred_element_type=f32)
         + wsl("bi1"))
    z = jnp.maximum(z, 0.0)
    z = jnp.maximum(jnp.dot(z, wsl("wi2"), preferred_element_type=f32) + wsl("bi2"), 0.0)
    a_hat = jnp.dot(z, wsl("wi3"), preferred_element_type=f32) + wsl("bi3")  # (1, n_act)

    # --- single lane-dense output slab: [ f_next_state | next_state_hat | action_hat | 0 ]
    pieces = [f_ns, ns_hat, a_hat]
    if pad_lanes > 0:
        pieces.append(jnp.zeros((1, pad_lanes), f32))
    out_ref[...] = jnp.concatenate(pieces, axis=-1)


def icm_forward(a_s, x_s, a_ns, x_ns, action, params):
    """Returns (f_next_state, next_state_hat, action_hat) — same semantics as ICM.forward."""
    f32 = jnp.float32
    F = params["w1"].shape[0]
    H = params["w1"].shape[1]
    n_act = params["wi3"].shape[1]
    N = x_s.shape[0]
    assert H % 8 == 0, "hidden_dim must be a multiple of 8 for aligned in-kernel slices"

    packed_w, offs = pack_params(params, n_act)            # static layout; cacheable

    # Stack both graphs: block-diagonal adjacency + stacked node features, and the
    # pooled-adjacency rows that replace (2nd aggregation + global_mean_pool).
    x_stack = jnp.concatenate([x_s, x_ns], axis=0).astype(f32)            # (2N, F)
    zNN = jnp.zeros((N, N), f32)
    a_block = jnp.concatenate(
        [jnp.concatenate([a_s, zNN], axis=1),
         jnp.concatenate([zNN, a_ns], axis=1)], axis=0)                   # (2N, 2N)
    z1N = jnp.zeros((1, N), f32)
    pooled = jnp.concatenate(
        [jnp.concatenate([jnp.mean(a_s, axis=0, keepdims=True), z1N], axis=1),
         jnp.concatenate([z1N, jnp.mean(a_ns, axis=0, keepdims=True)], axis=1)],
        axis=0)                                                           # (2, 2N)

    act = jnp.asarray(action, jnp.int32).reshape((1,))

    out_w = _round_up(2 * H + n_act, 128)
    pad_lanes = out_w - (2 * H + n_act)

    kernel = functools.partial(_icm_kernel, offs, H, n_act, pad_lanes)

    # TODO(synk): batch B (state, next_state, action) samples per pallas_call with a leading
    # "parallel" grid axis to amortize launch/DMA overhead and use v7x's second TensorCore.
    out = pl.pallas_call(
        kernel,
        out_shape=jax.ShapeDtypeStruct((1, out_w), jnp.float32),
        grid_spec=pltpu.PrefetchScalarGridSpec(
            num_scalar_prefetch=1,                         # `action` -> SMEM
            grid=(1,),
            in_specs=[
                pl.BlockSpec(packed_w.shape, lambda i, a: (0, 0)),
                pl.BlockSpec(x_stack.shape, lambda i, a: (0, 0)),
                pl.BlockSpec(a_block.shape, lambda i, a: (0, 0)),
                pl.BlockSpec(pooled.shape, lambda i, a: (0, 0)),
            ],
            out_specs=pl.BlockSpec((1, out_w), lambda i, a: (0, 0)),
        ),
        compiler_params=pltpu.CompilerParams(dimension_semantics=("arbitrary",)),
    )(act, packed_w, x_stack, a_block, pooled)

    f_ns = out[:, :H]
    ns_hat = out[:, H:2 * H]
    a_hat = out[:, 2 * H:2 * H + n_act]
    return f_ns, ns_hat, a_hat


# ----------------------------------------------------------------------------
# Glue: deterministic init, dense normalized adjacency, plain-JAX reference.
# ----------------------------------------------------------------------------
def build_gcn_adjacency(edge_index, num_nodes):
    """Dense D^{-1/2}(A + I)D^{-1/2}, messages flow src -> dst (row = dst)."""
    src, dst = edge_index[0], edge_index[1]
    a = jnp.zeros((num_nodes, num_nodes), jnp.float32)
    a = a.at[dst, src].set(1.0)
    a = a + jnp.eye(num_nodes, dtype=jnp.float32)  # self loops
    deg = jnp.sum(a, axis=1)
    d_inv_sqrt = jnp.where(deg > 0, 1.0 / jnp.sqrt(deg), 0.0)
    return a * d_inv_sqrt[:, None] * d_inv_sqrt[None, :]


def init_params(key, ndim, hidden_dim, n_act):
    ks = jax.random.split(key, 6)

    def lin(k, fan_in, fan_out):
        w = jax.random.normal(k, (fan_in, fan_out), jnp.float32) * 0.1
        b = jnp.zeros((1, fan_out), jnp.float32)
        return w, b

    w1, b1 = lin(ks[0], ndim, hidden_dim)
    w2, b2 = lin(ks[1], hidden_dim, hidden_dim)
    wf, bf = lin(ks[2], hidden_dim + n_act, hidden_dim)
    wi1, bi1 = lin(ks[3], 2 * hidden_dim, 128)
    wi2, bi2 = lin(ks[4], 128, 128)
    wi3, bi3 = lin(ks[5], 128, n_act)
    return dict(w1=w1, b1=b1, w2=w2, b2=b2, wf=wf, bf=bf,
                wi1=wi1, bi1=bi1, wi2=wi2, bi2=bi2, wi3=wi3, bi3=bi3)


def icm_forward_ref(a_s, x_s, a_ns, x_ns, action, params):
    def feat(a, x):
        h = a @ (x @ params["w1"]) + params["b1"]
        h = jax.nn.elu(h)
        h = a @ (h @ params["w2"]) + params["b2"]
        return jnp.mean(h, axis=0, keepdims=True)

    f_s, f_ns = feat(a_s, x_s), feat(a_ns, x_ns)
    n_act = params["wi3"].shape[1]
    onehot = jax.nn.one_hot(action, n_act, dtype=jnp.float32)
    ns_hat = jnp.concatenate([onehot, f_s], axis=-1) @ params["wf"] + params["bf"]
    z = jnp.concatenate([f_s, f_ns], axis=-1)
    h = jnp.maximum(z @ params["wi1"] + params["bi1"], 0.0)
    h = jnp.maximum(h @ params["wi2"] + params["bi2"], 0.0)
    a_hat = h @ params["wi3"] + params["bi3"]
    return f_ns, ns_hat, a_hat


if __name__ == "__main__":
    key = jax.random.PRNGKey(0)
    k_p, k_xs, k_xns, k_es, k_ens = jax.random.split(key, 5)

    N = 16           # nodes per graph
    E = 32           # edges per graph
    NDIM = 8         # input node-feature dim
    HIDDEN = 32      # hidden_dim
    N_ACT = 4        # number of actions

    params = init_params(k_p, NDIM, HIDDEN, N_ACT)

    x_s = jax.random.normal(k_xs, (N, NDIM), jnp.float32)
    x_ns = jax.random.normal(k_xns, (N, NDIM), jnp.float32)
    ei_s = jax.random.randint(k_es, (2, E), 0, N)
    ei_ns = jax.random.randint(k_ens, (2, E), 0, N)
    a_s = build_gcn_adjacency(ei_s, N)
    a_ns = build_gcn_adjacency(ei_ns, N)

    action = jnp.array([2], dtype=jnp.int32)  # single-graph batch -> B = 1

    f_ns, ns_hat, a_hat = icm_forward(a_s, x_s, a_ns, x_ns, action, params)
    jax.block_until_ready((f_ns, ns_hat, a_hat))

    # correctness check against plain-JAX reference
    r_f_ns, r_ns_hat, r_a_hat = icm_forward_ref(a_s, x_s, a_ns, x_ns, action, params)
    assert f_ns.shape == (1, HIDDEN) and ns_hat.shape == (1, HIDDEN) and a_hat.shape == (1, N_ACT)
    assert jnp.allclose(f_ns, r_f_ns, atol=1e-4)
    assert jnp.allclose(ns_hat, r_ns_hat, atol=1e-4)
    assert jnp.allclose(a_hat, r_a_hat, atol=1e-4)

    print("KERNEL_OK")
</pallas_src>

<mosaic_0001>
module attributes {stable_mosaic.version = 11 : i64} {
  func.func @_icm_kernel(%arg0: i32, %arg1: memref<1xi32, #tpu.memory_space<smem>>, %arg2: memref<448x128xf32, #tpu.memory_space<vmem>>, %arg3: memref<32x8xf32, #tpu.memory_space<vmem>>, %arg4: memref<32x32xf32, #tpu.memory_space<vmem>>, %arg5: memref<2x32xf32, #tpu.memory_space<vmem>>, %arg6: memref<1x128xf32, #tpu.memory_space<vmem>>) attributes {dimension_semantics = [#tpu.dimension_semantics<arbitrary>], iteration_bounds = array<i64: 1>, scalar_prefetch = 1 : i64, scratch_operands = 0 : i64, tpu.core_type = #tpu.core_type<tc>, window_params = [{pipeline_mode = #tpu.pipeline_mode<synchronous>, transform_indices = @transform_0, window_bounds = array<i64: 448, 128>}, {pipeline_mode = #tpu.pipeline_mode<synchronous>, transform_indices = @transform_1, window_bounds = array<i64: 32, 8>}, {pipeline_mode = #tpu.pipeline_mode<synchronous>, transform_indices = @transform_2, window_bounds = array<i64: 32, 32>}, {pipeline_mode = #tpu.pipeline_mode<synchronous>, transform_indices = @transform_3, window_bounds = array<i64: 2, 32>}, {pipeline_mode = #tpu.pipeline_mode<synchronous>, transform_indices = @transform_4, window_bounds = array<i64: 1, 128>}]} {
    %c0 = arith.constant 0 : index
    %c0_0 = arith.constant 0 : index
    %0 = vector.load %arg3[%c0, %c0_0] : memref<32x8xf32, #tpu.memory_space<vmem>>, vector<32x8xf32>
    %c0_1 = arith.constant 0 : index
    %c0_2 = arith.constant 0 : index
    %1 = vector.load %arg2[%c0_1, %c0_2] : memref<448x128xf32, #tpu.memory_space<vmem>>, vector<8x32xf32>
    %cst = arith.constant dense<0.000000e+00> : vector<32x32xf32>
    %2 = tpu.matmul %0, %1, %cst {dimension_numbers = #tpu.dot_dimension_numbers<[1], [0], [0], [1], [0, 0, 1, 1], [], []>} : vector<32x8xf32>, vector<8x32xf32>, vector<32x32xf32> -> vector<32x32xf32>
    %c0_3 = arith.constant 0 : index
    %c0_4 = arith.constant 0 : index
    %3 = vector.load %arg4[%c0_3, %c0_4] : memref<32x32xf32, #tpu.memory_space<vmem>>, vector<32x32xf32>
    %cst_5 = arith.constant dense<0.000000e+00> : vector<32x32xf32>
    %4 = tpu.matmul %3, %2, %cst_5 {dimension_numbers = #tpu.dot_dimension_numbers<[1], [0], [0], [1], [0, 0, 1, 1], [], []>} : vector<32x32xf32>, vector<32x32xf32>, vector<32x32xf32> -> vector<32x32xf32>
    %c8 = arith.constant 8 : index
    %c0_6 = arith.constant 0 : index
    %5 = vector.load %arg2[%c8, %c0_6] : memref<448x128xf32, #tpu.memory_space<vmem>>, vector<1x32xf32>
    %6 = vector.broadcast %5 : vector<1x32xf32> to vector<32x32xf32>
    %7 = arith.addf %4, %6 : vector<32x32xf32>
    %cst_7 = arith.constant 0.000000e+00 : f32
    %8 = vector.broadcast %cst_7 : f32 to vector<32x32xf32>
    %9 = arith.cmpf ogt, %7, %8 : vector<32x32xf32>
    %cst_8 = arith.constant 0.000000e+00 : f32
    %10 = vector.broadcast %cst_8 : f32 to vector<32x32xf32>
    %11 = arith.minimumf %7, %10 : vector<32x32xf32>
    %12 = math.exp %11 : vector<32x32xf32>
    %cst_9 = arith.constant 1.000000e+00 : f32
    %13 = vector.broadcast %cst_9 : f32 to vector<32x32xf32>
    %14 = arith.subf %12, %13 : vector<32x32xf32>
    %15 = arith.select %9, %7, %14 : vector<32x32xi1>, vector<32x32xf32>
    %c16 = arith.constant 16 : index
    %c0_10 = arith.constant 0 : index
    %16 = vector.load %arg2[%c16, %c0_10] : memref<448x128xf32, #tpu.memory_space<vmem>>, vector<32x32xf32>
    %cst_11 = arith.constant dense<0.000000e+00> : vector<32x32xf32>
    %17 = tpu.matmul %15, %16, %cst_11 {dimension_numbers = #tpu.dot_dimension_numbers<[1], [0], [0], [1], [0, 0, 1, 1], [], []>} : vector<32x32xf32>, vector<32x32xf32>, vector<32x32xf32> -> vector<32x32xf32>
    %c0_12 = arith.constant 0 : index
    %c0_13 = arith.constant 0 : index
    %18 = vector.load %arg5[%c0_12, %c0_13] : memref<2x32xf32, #tpu.memory_space<vmem>>, vector<2x32xf32>
    %cst_14 = arith.constant dense<0.000000e+00> : vector<2x32xf32>
    %19 = tpu.matmul %18, %17, %cst_14 {dimension_numbers = #tpu.dot_dimension_numbers<[1], [0], [0], [1], [0, 0, 1, 1], [], []>} : vector<2x32xf32>, vector<32x32xf32>, vector<2x32xf32> -> vector<2x32xf32>
    %c48 = arith.constant 48 : index
    %c0_15 = arith.constant 0 : index
    %20 = vector.load %arg2[%c48, %c0_15] : memref<448x128xf32, #tpu.memory_space<vmem>>, vector<1x32xf32>
    %21 = vector.broadcast %20 : vector<1x32xf32> to vector<2x32xf32>
    %22 = arith.addf %19, %21 : vector<2x32xf32>
    %23 = vector.extract_strided_slice %22 {offsets = [0, 0], sizes = [1, 32], strides = [1, 1]} : vector<2x32xf32> to vector<1x32xf32>
    %24 = vector.extract_strided_slice %22 {offsets = [1, 0], sizes = [1, 32], strides = [1, 1]} : vector<2x32xf32> to vector<1x32xf32>
    %c0_16 = arith.constant 0 : index
    %25 = memref.load %arg1[%c0_16] : memref<1xi32, #tpu.memory_space<smem>>
    %26 = tpu.iota {dimensions = array<i32: 0>} : vector<4x32xi32>
    %27 = vector.broadcast %25 : i32 to vector<4x32xi32>
    %28 = arith.cmpi eq, %26, %27 : vector<4x32xi32>
    %c56 = arith.constant 56 : index
    %c0_17 = arith.constant 0 : index
    %29 = vector.load %arg2[%c56, %c0_17] : memref<448x128xf32, #tpu.memory_space<vmem>>, vector<4x32xf32>
    %cst_18 = arith.constant 0.000000e+00 : f32
    %30 = vector.broadcast %cst_18 : f32 to vector<4x32xf32>
    %31 = arith.select %28, %29, %30 : vector<4x32xi1>, vector<4x32xf32>
    %cst_19 = arith.constant dense<0.000000e+00> : vector<32xf32>
    %32 = vector.multi_reduction <add>, %31, %cst_19 [0] : vector<4x32xf32> to vector<32xf32>
    %33 = vector.shape_cast %32 : vector<32xf32> to vector<1x32xf32>
    %c64 = arith.constant 64 : index
    %c0_20 = arith.constant 0 : index
    %34 = vector.load %arg2[%c64, %c0_20] : memref<448x128xf32, #tpu.memory_space<vmem>>, vector<32x32xf32>
    %cst_21 = arith.constant dense<0.000000e+00> : vector<1x32xf32>
    %35 = tpu.matmul %23, %34, %cst_21 {dimension_numbers = #tpu.dot_dimension_numbers<[1], [0], [0], [1], [0, 0, 1, 1], [], []>} : vector<1x32xf32>, vector<32x32xf32>, vector<1x32xf32> -> vector<1x32xf32>
    %36 = arith.addf %33, %35 : vector<1x32xf32>
    %c96 = arith.constant 96 : index
    %c0_22 = arith.constant 0 : index
    %37 = vector.load %arg2[%c96, %c0_22] : memref<448x128xf32, #tpu.memory_space<vmem>>, vector<1x32xf32>
    %38 = arith.addf %36, %37 : vector<1x32xf32>
    %c104 = arith.constant 104 : index
    %c0_23 = arith.constant 0 : index
    %39 = vector.load %arg2[%c104, %c0_23] : memref<448x128xf32, #tpu.memory_space<vmem>>, vector<32x128xf32>
    %c136 = arith.constant 136 : index
    %c0_24 = arith.constant 0 : index
    %40 = vector.load %arg2[%c136, %c0_24] : memref<448x128xf32, #tpu.memory_space<vmem>>, vector<32x128xf32>
    %cst_25 = arith.constant dense<0.000000e+00> : vector<1x128xf32>
    %41 = tpu.matmul %23, %39, %cst_25 {dimension_numbers = #tpu.dot_dimension_numbers<[1], [0], [0], [1], [0, 0, 1, 1], [], []>} : vector<1x32xf32>, vector<32x128xf32>, vector<1x128xf32> -> vector<1x128xf32>
    %cst_26 = arith.constant dense<0.000000e+00> : vector<1x128xf32>
    %42 = tpu.matmul %24, %40, %cst_26 {dimension_numbers = #tpu.dot_dimension_numbers<[1], [0], [0], [1], [0, 0, 1, 1], [], []>} : vector<1x32xf32>, vector<32x128xf32>, vector<1x128xf32> -> vector<1x128xf32>
    %43 = arith.addf %41, %42 : vector<1x128xf32>
    %c168 = arith.constant 168 : index
    %c0_27 = arith.constant 0 : index
    %44 = vector.load %arg2[%c168, %c0_27] : memref<448x128xf32, #tpu.memory_space<vmem>>, vector<1x128xf32>
    %45 = arith.addf %43, %44 : vector<1x128xf32>
    %cst_28 = arith.constant 0.000000e+00 : f32
    %46 = vector.broadcast %cst_28 : f32 to vector<1x128xf32>
    %47 = arith.maximumf %45, %46 : vector<1x128xf32>
    %c176 = arith.constant 176 : index
    %c0_29 = arith.constant 0 : index
    %48 = vector.load %arg2[%c176, %c0_29] : memref<448x128xf32, #tpu.memory_space<vmem>>, vector<128x128xf32>
    %cst_30 = arith.constant dense<0.000000e+00> : vector<1x128xf32>
    %49 = tpu.matmul %47, %48, %cst_30 {dimension_numbers = #tpu.dot_dimension_numbers<[1], [0], [0], [1], [0, 0, 1, 1], [], []>} : vector<1x128xf32>, vector<128x128xf32>, vector<1x128xf32> -> vector<1x128xf32>
    %c304 = arith.constant 304 : index
    %c0_31 = arith.constant 0 : index
    %50 = vector.load %arg2[%c304, %c0_31] : memref<448x128xf32, #tpu.memory_space<vmem>>, vector<1x128xf32>
    %51 = arith.addf %49, %50 : vector<1x128xf32>
    %cst_32 = arith.constant 0.000000e+00 : f32
    %52 = vector.broadcast %cst_32 : f32 to vector<1x128xf32>
    %53 = arith.maximumf %51, %52 : vector<1x128xf32>
    %c312 = arith.constant 312 : index
    %c0_33 = arith.constant 0 : index
    %54 = vector.load %arg2[%c312, %c0_33] : memref<448x128xf32, #tpu.memory_space<vmem>>, vector<128x4xf32>
    %cst_34 = arith.constant dense<0.000000e+00> : vector<1x4xf32>
    %55 = tpu.matmul %53, %54, %cst_34 {dimension_numbers = #tpu.dot_dimension_numbers<[1], [0], [0], [1], [0, 0, 1, 1], [], []>} : vector<1x128xf32>, vector<128x4xf32>, vector<1x4xf32> -> vector<1x4xf32>
    %c440 = arith.constant 440 : index
    %c0_35 = arith.constant 0 : index
    %56 = vector.load %arg2[%c440, %c0_35] : memref<448x128xf32, #tpu.memory_space<vmem>>, vector<1x4xf32>
    %57 = arith.addf %55, %56 : vector<1x4xf32>
    %cst_36 = arith.constant 0.000000e+00 : f32
    %58 = vector.broadcast %cst_36 : f32 to vector<1x60xf32>
    %59 = tpu.concatenate %24, %38, %57, %58 in 1 : vector<1x32xf32>, vector<1x32xf32>, vector<1x4xf32>, vector<1x60xf32> -> vector<1x128xf32>
    %c0_37 = arith.constant 0 : index
    %c0_38 = arith.constant 0 : index
    %60 = vector.load %arg6[%c0_37, %c0_38] : memref<1x128xf32, #tpu.memory_space<vmem>>, vector<1x128xf32>
    tpu.vector_store %arg6[%c0_37, %c0_38], %59 {strides = array<i32>} : memref<1x128xf32, #tpu.memory_space<vmem>>, vector<1x128xf32>,
    return
  }
  func.func @transform_0(%arg0: i32, %arg1: memref<1xi32, #tpu.memory_space<smem>>) -> (i32, i32) {
    %c0_i32 = arith.constant 0 : i32
    %c0_i32_0 = arith.constant 0 : i32
    %c0_i32_1 = arith.constant 0 : i32
    return %c0_i32, %c0_i32_0 : i32, i32
  }
  func.func @transform_1(%arg0: i32, %arg1: memref<1xi32, #tpu.memory_space<smem>>) -> (i32, i32) {
    %c0_i32 = arith.constant 0 : i32
    %c0_i32_0 = arith.constant 0 : i32
    %c0_i32_1 = arith.constant 0 : i32
    return %c0_i32, %c0_i32_0 : i32, i32
  }
  func.func @transform_2(%arg0: i32, %arg1: memref<1xi32, #tpu.memory_space<smem>>) -> (i32, i32) {
    %c0_i32 = arith.constant 0 : i32
    %c0_i32_0 = arith.constant 0 : i32
    %c0_i32_1 = arith.constant 0 : i32
    return %c0_i32, %c0_i32_0 : i32, i32
  }
  func.func @transform_3(%arg0: i32, %arg1: memref<1xi32, #tpu.memory_space<smem>>) -> (i32, i32) {
    %c0_i32 = arith.constant 0 : i32
    %c0_i32_0 = arith.constant 0 : i32
    %c0_i32_1 = arith.constant 0 : i32
    return %c0_i32, %c0_i32_0 : i32, i32
  }
  func.func @transform_4(%arg0: i32, %arg1: memref<1xi32, #tpu.memory_space<smem>>) -> (i32, i32) {
    %c0_i32 = arith.constant 0 : i32
    %c0_i32_0 = arith.constant 0 : i32
    %c0_i32_1 = arith.constant 0 : i32
    return %c0_i32, %c0_i32_0 : i32, i32
  }
}

</mosaic_0001>

<bundles_post_ra>
// kernel: tpu_custom_call.1
= control target key start
LH: loop header
LB: loop body
LE: loop exit
PB: predicated region body
PF: predicated region fallthrough
CT: control target
= control target key end

     0   :  { %11 = vsyncpa [#allocation5], 0  ;;  %s1451_s0 = inlined_call_operand.<no memory space> [shape: s32[1], index: 0, kind: input, shape index: {}]   ;;  %s1452_s1 = inlined_call_operand.hbm [shape: f32[448,128], index: 1, kind: input, shape index: {}]   ;;  %s1453_s2 = inlined_call_operand.vmem [shape: f32[32,8], index: 2, kind: input, shape index: {}]   ;;  %s1454_s3 = inlined_call_operand.vmem [shape: f32[32,32], index: 3, kind: input, shape index: {}]   ;;  %s1455_s4 = inlined_call_operand.vmem [shape: f32[2,32], index: 4, kind: input, shape index: {}]   ;;  %s1456_s5 = inlined_call_operand.hbm [shape: f32[1,128], index: 5, kind: output, shape index: {}]  }
   0x1   :  { %12 = vsyncpa [#allocation6], 0  ;;  %s1303_s18 = smov [#allocation4]   ;;  %s1255_s22 = scalar_lea.hbm %s1452_s1, 7168 }
   0x2   :  { %s18_s19 = sshll.u32 %s1303_s18, 4  ;;  %p1256_p0 = scmp.ne.s32.totalorder %s1452_s1, %s1255_s22  ;;  %s19_s19 = int_to_ptr.vmem [resolvable:$true] %s18_s19 }
   0x3   :  { %p1259_p1 = scmp.lt.u32.totalorder %s1255_s22, %s1452_s1 }
   0x5   :  { %p1261_p2 = pnand %p1259_p1, %p1256_p0 }
   0x7   :  { %1264 = shalt.err (!%p1261_p2)
}
   0x8   :  { %s1265_s27 = scalar_lea.vmem %s19_s19, 7168  ;;  %p1270_p4 = scmp.lt.s32.totalorder %s19_s19, %s19_s19 }
   0x9   :  { %p1266_p3 = scmp.ne.s32.totalorder %s19_s19, %s1265_s27  ;;  %p1271_p5 = scmp.lt.s32.totalorder %s1265_s27, %s1265_s27 }
   0xb   :  { %p1272_p6 = por %p1271_p5, %p1270_p4 }
   0xd   :  { %p1273_p7 = pnand %p1272_p6, %p1266_p3 }
   0xf   :  { %1276 = shalt.err (!%p1273_p7)
}
  0x10   :  { %s1304_s28 = smov 128   ;;  %s1305_s29 = smov 8  }
  0x11   :  { %24 = dma.hbm_to_vmem [thread:$0]  %s1452_s1, 7168, %s19_s19, [#allocation5], %s1304_s28, %s1304_s28, %s1305_s29  }
  0x12   :  { %1299 = dma.done.wait [#allocation5], 7168  }
  0x13   :  { %1300 = vsyncadd [#allocation5], 4294960128  ;;  %vm39_vm0 = vcmask 64512   ;;  %v38_v0 = vld [vmem:[#allocation4] sm:$0xff]  ;;  %v35_v2 = vld [vmem:[%s1453_s2 + $0x8] sm:$0xff]  ;;  %vm146_vm1 = vcmask 261120  }
  0x14   :  { %v34_v1 = vld [vmem:[%s1453_s2] sm:$0xff]  ;;  %1000 = vmatprep.subr.mxu0 %v38_v0  ;;  %v36_v3 = vld [vmem:[%s1453_s2 + $0x10] sm:$0xff]  ;;  %v37_v4 = vld [vmem:[%s1453_s2 + $0x18] sm:$0xff]  ;;  %v1306_v50 = vmov 0.0|0.0   ;;  %vm1307_vm6 = vmmov 0   ;;  %v1308_v51 = vmov 0.0  }
  0x15   :  { %1002 = vmatprep.mubr.msk.f32.mxu0 %vm39_vm0, %v34_v1  ;;  %1001 = vmatpush3.msra.mxu0 %v38_v0  ;;  %v137_v5 = vld [vmem:[%s1454_s3] sm:$0xff]  ;;  %v138_v12 = vld [vmem:[%s1454_s3 + $0x8] sm:$0xff]  ;;  %v139_v13 = vld [vmem:[%s1454_s3 + $0x10] sm:$0xff]  ;;  %vm455_vm8 = vcmask 257024   ;;  %s1310_s23 = smov 64   ;;  %vm883_vm9 = vcmask 523264  }
  0x16   :  { %1003 = vmatmul.mubr.msk.f32.vlgmr.msra.gmra.mrb[0].mxu0 %vm39_vm0, %v35_v2  ;;  %1016 = vmatprep.mubr.msk.f32.mxu1 %vm146_vm1, %v137_v5  ;;  %v140_v14 = vld [vmem:[%s1454_s3 + $0x18] sm:$0xff]  ;;  %v268_v15 = vld [vmem:[#allocation4 + $0x10] sm:$0xff]  ;;  %v270_v18 = vld [vmem:[#allocation4 + $0x20] sm:$0xff]  ;;  %s1311_s24 = smov [#allocation7]   ;;  %vm885_vm10 = vcmask 556032  }
  0x17   :  { %1005 = vmatprep.mubr.msk.f32.mxu0 %vm39_vm0, %v36_v3  ;;  %v269_v16 = vld [vmem:[#allocation4 + $0x18] sm:$0xff]  ;;  %v271_v19 = vld [vmem:[#allocation4 + $0x28] sm:$0xff]  ;;  %v463_v52 = vld [vmem:[#allocation4 + $0x40] sm:$0xff]  ;;  %s894_s25 = sshll.u32 %s1311_s24, 4  ;;  %s895_s25 = int_to_ptr.vmem [resolvable:$true] %s894_s25 }
  0x18   :  { %v1158_v17 = vpack.c.bf16 %v269_v16, %v268_v15  ;;  %v1162_v20 = vpack.c.bf16 %v271_v19, %v270_v18  ;;  %v907_v21 = vld [vmem:[#allocation4 + $0x8] ss:$0 sm:$0xff]  ;;  %v465_v55 = vld [vmem:[#allocation4 + $0x50] sm:$0xff]  ;;  %v466_v56 = vld [vmem:[#allocation4 + $0x58] sm:$0xff]  ;;  %s1277_s26 = scalar_lea.vmem %s895_s25, 16  ;;  %s1281_s27 = scalar_lea.vmem %s895_s25, 32 }
  0x19   :  { %v464_v53 = vld [vmem:[#allocation4 + $0x48] sm:$0xff]  ;;  %v1176_v57 = vpack.c.bf16 %v466_v56, %v465_v55  ;;  %v548_v0 = vld [vmem:[#allocation4 + $0x90] sm:$0xff]  ;;  %v369_v2 = vld [vmem:[%s1455_s4] sm:$0x3]  ;;  %p1278_p8 = scmp.ne.s32.totalorder %s895_s25, %s1277_s26  ;;  %p1282_p9 = scmp.lt.s32.totalorder %s895_s25, %s895_s25 }
  0x1a   :  { %1006 = vmatmul.mubr.msk.f32.gmra.mrb[2].mxu0 %vm39_vm0, %v37_v4  ;;  %1159 = vmatprep.subr.bf16.mxu0 %v1158_v17  ;;  %v1173_v54 = vpack.c.bf16 %v464_v53, %v463_v52  ;;  %v547_v63 = vld [vmem:[#allocation4 + $0x88] sm:$0xff]  ;;  %v549_v4 = vld [vmem:[#allocation4 + $0x98] sm:$0xff]  ;;  %v550_v5 = vld [vmem:[#allocation4 + $0xa0] sm:$0xff]  ;;  %p1283_p10 = scmp.lt.s32.totalorder %s1281_s27, %s1277_s26 }
  0x1b   :  { %1161 = vmatpush3.bf16.msra.mxu0 %v1158_v17  ;;  %v1179_v3 = vpack.c.bf16 %v548_v0, %v547_v63  ;;  %v545_v16 = vld [vmem:[#allocation4 + $0x78] sm:$0xff]  ;;  %v546_v17 = vld [vmem:[#allocation4 + $0x80] sm:$0xff]  ;;  %v787_v56 = vld [vmem:[#allocation4 + $0x148] sm:$0xff] }
  0x1c   :  { %1163 = vmatprep.subr.bf16.mxu0 %v1162_v20  ;;  %v786_v55 = vld [vmem:[#allocation4 + $0x140] sm:$0xff]  ;;  %p1284_p11 = por %p1283_p10, %p1282_p9 }
  0x1d   :  { %v541_v0 = vld [vmem:[#allocation4 + $0x60] sm:$0x1] }
  0x1e   :  { %p1285_p12 = pnand %p1284_p11, %p1278_p8 }
  0x1f   :  { %1165 = vmatpush3.bf16.msra.mxu0 %v1162_v20  ;;  %v699_v20 = vld [vmem:[#allocation4 + $0xc0] sm:$0xff] }
  0x20   :  { %1172 = vmatprep.subr.bf16.mxu0 %v1306_v50 }
  0xe9   :  { %v1004_v6 = vpop.f32.mrb[0].mxu0 }
  0xea   :  { %v118_v7 = vpop.f32.mrb[1].mxu0 }
  0xeb   :  { %v1150_v8 = vpack.c.bf16 %v1004_v6, %v118_v7  ;;  %v1182_v6 = vpack.c.bf16 %v550_v5, %v549_v4  ;;  %v543_v7 = vld [vmem:[#allocation4 + $0x68] sm:$0xff] }
  0xec   :  { %v791_v5 = vld [vmem:[#allocation4 + $0x168] sm:$0xff] }
  0xed   :  { %v1007_v9 = vpop.f32.mrb[2].mxu0  ;;  %1151 = vmatprep.subr.bf16.mxu1 %v1150_v8 }
  0xee   :  { %v128_v10 = vpop.f32.mrb[3].mxu0  ;;  %1153 = vmatpush3.bf16.msra.mxu1 %v1150_v8  ;;  %v544_v8 = vld [vmem:[#allocation4 + $0x70] sm:$0xff] }
  0xef   :  { %v1154_v11 = vpack.c.bf16 %v1007_v9, %v128_v10  ;;  %v920_v9 = vld [vmem:[#allocation4 + $0x30] ss:$0 sm:$0xff] }
  0xf0   :  { %v697_v10 = vld [vmem:[#allocation4 + $0xb0] sm:$0xff] }
  0xf1   :  { %1155 = vmatprep.subr.bf16.mxu1 %v1154_v11 }
  0xf2   :  { %1157 = vmatpush3.bf16.msra.mxu1 %v1154_v11  ;;  %v698_v11 = vld [vmem:[#allocation4 + $0xb8] sm:$0xff] }
  0xf3   :  { %1166 = vmatprep.subr.bf16.mxu1 %v1306_v50  ;;  %v1191_v18 = vpack.c.bf16 %v698_v11, %v697_v10  ;;  %v793_v11 = vld [vmem:[#allocation4 + $0x178] sm:$0xff] }
  0xf5   :  { %1017 = vmatmul.mubr.msk.f32.vlgmr.msra.gmra.mrb[0].mxu1 %vm146_vm1, %v138_v12 }
  0xf6   :  { %1019 = vmatprep.mubr.msk.f32.mxu1 %vm146_vm1, %v139_v13  ;;  %v1185_v13 = vpack.c.bf16 %v544_v8, %v543_v7 }
  0xf9   :  { %1020 = vmatmul.mubr.msk.f32.gmra.mrb[2].mxu1 %vm146_vm1, %v140_v14 }
  0xfa   :  { %1044 = vmatprep.mubr.msk.f32.mxu1 %vm1307_vm6, %v1308_v51 }
 0x1c8   :  { %v1018_v22 = vpop.f32.mrb[0].mxu1 }
 0x1c9   :  { %v231_v23 = vadd.f32 %v1018_v22, %v907_v21  ;;  %v225_v24 = vpop.f32.mrb[1].mxu1  ;;  %v1188_v22 = vpack.c.bf16 %v546_v17, %v545_v16 }
 0x1ca   :  { %v226_v25 = vadd.f32 %v907_v21, %v225_v24  ;;  %v701_v24 = vld [vmem:[#allocation4 + $0xd0] sm:$0xff] }
 0x1cb   :  { %v249_v26 = vmin.f32 %v231_v23, 0.0  ;;  %vm245_vm3 = vcmp.gt.f32.partialorder %v231_v23, 0.0 }
 0x1cc   :  { %v248_v27 = vmin.f32 %v226_v25, 0.0  ;;  %v1021_v28 = vpop.f32.mrb[2].mxu1  ;;  %vm244_vm2 = vcmp.gt.f32.partialorder %v226_v25, 0.0 }
 0x1cd   :  { %v254_v29 = vmul.f32 1.442695, %v249_v26  ;;  %v241_v30 = vadd.f32 %v1021_v28, %v907_v21  ;;  %v235_v31 = vpop.f32.mrb[3].mxu1  ;;  %v704_v28 = vld [vmem:[#allocation4 + $0xe8] sm:$0xff] }
 0x1ce   :  { %v252_v32 = vmul.f32 1.442695, %v248_v27  ;;  %v236_v33 = vadd.f32 %v907_v21, %v235_v31  ;;  %v700_v21 = vld [vmem:[#allocation4 + $0xc8] sm:$0xff]  ;;  %v703_v27 = vld [vmem:[#allocation4 + $0xe0] sm:$0xff]  ;;  %v706_v31 = vld [vmem:[#allocation4 + $0xf8] sm:$0xff] }
 0x1cf   :  { %1247 = vpow2.f32 %v254_v29  ;;  %v251_v34 = vmin.f32 %v241_v30, 0.0  ;;  %vm247_vm5 = vcmp.gt.f32.partialorder %v241_v30, 0.0  ;;  %v1200_v29 = vpack.c.bf16 %v704_v28, %v703_v27  ;;  %v799_v27 = vld [vmem:[#allocation4 + $0x1a8] sm:$0xff]  ;;  %v800_v28 = vld [vmem:[#allocation4 + $0x1b0] sm:$0xff] }
 0x1d0   :  { %1249 = vpow2.f32 %v252_v32  ;;  %v250_v35 = vmin.f32 %v236_v33, 0.0  ;;  %vm246_vm4 = vcmp.gt.f32.partialorder %v236_v33, 0.0 }
 0x1d1   :  { %v258_v36 = vmul.f32 1.442695, %v251_v34  ;;  %v708_v34 = vld [vmem:[#allocation4 + $0x108] sm:$0xff] }
 0x1d2   :  { %v256_v37 = vmul.f32 1.442695, %v250_v35 }
 0x1d3   :  { %1251 = vpow2.f32 %v258_v36  ;;  %v709_v36 = vld [vmem:[#allocation4 + $0x110] sm:$0xff] }
 0x1d4   :  { %1253 = vpow2.f32 %v256_v37  ;;  %v710_v37 = vld [vmem:[#allocation4 + $0x118] sm:$0xff] }
 0x1d9   :  { %v1248_v38 = vpop.eup %1247 }
 0x1da   :  { %v1250_v39 = vpop.eup %1249  ;;  %v913_v40 = vadd.f32 -1.0, %v1248_v38  ;;  %v1209_v38 = vpack.c.bf16 %v710_v37, %v709_v36 }
 0x1db   :  { %v912_v41 = vadd.f32 -1.0, %v1250_v39  ;;  %v711_v39 = vld [vmem:[#allocation4 + $0x120] sm:$0xff] }
 0x1dc   :  { %v265_v45 = vsel %vm245_vm3, %v231_v23, %v913_v40  ;;  %v1194_v23 = vpack.c.bf16 %v700_v21, %v699_v20  ;;  %v712_v40 = vld [vmem:[#allocation4 + $0x128] sm:$0xff]  ;;  %v796_v20 = vld [vmem:[#allocation4 + $0x190] sm:$0xff] }
 0x1dd   :  { %v1252_v42 = vpop.eup %1251  ;;  %v264_v43 = vsel %vm244_vm2, %v226_v25, %v912_v41  ;;  %v702_v25 = vld [vmem:[#allocation4 + $0xd8] sm:$0xff]  ;;  %v1212_v41 = vpack.c.bf16 %v712_v40, %v711_v39 }
 0x1de   :  { %v1254_v44 = vpop.eup %1253  ;;  %1030 = vmatprep.mubr.msk.f32.mxu0 %vm146_vm1, %v264_v43  ;;  %v915_v46 = vadd.f32 -1.0, %v1252_v42  ;;  %v1197_v26 = vpack.c.bf16 %v702_v25, %v701_v24  ;;  %v449_v42 = vlaneseq  ;;  %v797_v24 = vld [vmem:[#allocation4 + $0x198] sm:$0xff]  ;;  %v798_v25 = vld [vmem:[#allocation4 + $0x1a0] sm:$0xff] }
 0x1df   :  { %1031 = vmatmul.mubr.msk.f32.vlgmr.msra.gmra.mrb[4].mxu0 %vm146_vm1, %v265_v45  ;;  %v914_v47 = vadd.f32 -1.0, %v1254_v44  ;;  %v451_v44 = vstv %s1451_s0  ;;  %v453_v45 = vld [vmem:[#allocation4 + $0x38] sm:$0xf]  ;;  %s1309_s0 = smov 32  }
 0x1e0   :  { %v267_v49 = vsel %vm247_vm5, %v241_v30, %v915_v46  ;;  %1174 = vmatpush3.bf16.msra.mxu0 %v1173_v54  ;;  %v705_v30 = vld [vmem:[#allocation4 + $0xf0] sm:$0xff]  ;;  %v450_v43 = vshrl.u32 %v449_v42, 7  ;;  %v785_v54 = vld [vmem:[#allocation4 + $0x138] sm:$0xff] }
 0x1e1   :  { %v266_v48 = vsel %vm246_vm4, %v236_v33, %v914_v47  ;;  %1175 = vmatprep.subr.bf16.mxu0 %v1306_v50  ;;  %v1203_v32 = vpack.c.bf16 %v706_v31, %v705_v30  ;;  %v707_v33 = vld [vmem:[#allocation4 + $0x100] sm:$0xff]  ;;  %v713_v30 = vld [vmem:[#allocation4 + $0x130] sm:$0x1] }
 0x1e2   :  { %1033 = vmatprep.mubr.msk.f32.mxu0 %vm146_vm1, %v266_v48  ;;  %v1206_v35 = vpack.c.bf16 %v708_v34, %v707_v33  ;;  %vm452_vm7 = vcmp.eq.s32.totalorder %v450_v43, %v451_v44 }
 0x1e3   :  { %1034 = vmatmul.mubr.msk.f32.gmra.mrb[6].mxu0 %vm146_vm1, %v267_v49  ;;  %v454_v46 = vsel %vm452_vm7, %v453_v45, 0.0 }
 0x1e4   :  { %1055 = vmatprep.mubr.msk.f32.mxu0 %vm1307_vm6, %v1308_v51  ;;  %1177 = vmatpush3.bf16.msra.mxu0 %v1176_v57  ;;  %v456_v47 = vsel %vm455_vm8, %v454_v46, 0.0  ;;  %v1215_v57 = vpack.c.bf16 %v786_v55, %v785_v54 }
 0x1e5   :  { %1184 = vmatprep.subr.bf16.mxu0 %v1306_v50  ;;  %v457_v48 = vrot.slane %v456_v47, 4 }
 0x1e7   :  { %v458_v49 = vadd.f32 %v457_v48, %v456_v47 }
 0x2b2   :  { %v1032_v58 = vpop.f32.mrb[4].mxu0 }
 0x2b3   :  { %v350_v59 = vpop.f32.mrb[5].mxu0 }
 0x2b4   :  { %v1167_v60 = vpack.c.bf16 %v1032_v58, %v350_v59  ;;  %v788_v58 = vld [vmem:[#allocation4 + $0x150] sm:$0xff] }
 0x2b6   :  { %v1035_v61 = vpop.f32.mrb[6].mxu0  ;;  %1168 = vmatpush3.bf16.msra.mxu1 %v1167_v60  ;;  %v1218_v60 = vpack.c.bf16 %v788_v58, %v787_v56 }
 0x2b7   :  { %v360_v62 = vpop.f32.mrb[7].mxu0  ;;  %1169 = vmatprep.subr.bf16.mxu1 %v1306_v50 }
 0x2b8   :  { %v1170_v1 = vpack.c.bf16 %v1035_v61, %v360_v62  ;;  %v789_v61 = vld [vmem:[#allocation4 + $0x158] sm:$0xff]  ;;  %v790_v62 = vld [vmem:[#allocation4 + $0x160] sm:$0xff] }
 0x2ba   :  { %1171 = vmatpush3.bf16.msra.mxu1 %v1170_v1 }
 0x2bb   :  { %1178 = vmatprep.subr.bf16.mxu1 %v1306_v50 }
 0x2bd   :  { %1045 = vmatmul.mubr.msk.f32.vlgmr.msra.gmra.mrb[4].mxu1 %vm146_vm1, %v369_v2 }
 0x2be   :  { %1180 = vmatpush3.bf16.msra.mxu1 %v1179_v3  ;;  %1066 = vmatprep.mubr.msk.f32.mxu1 %vm1307_vm6, %v1308_v51  ;;  %v1221_v3 = vpack.c.bf16 %v790_v62, %v789_v61 }
 0x2bf   :  { %1181 = vmatprep.subr.bf16.mxu1 %v1306_v50 }
 0x2c2   :  { %1183 = vmatpush3.bf16.msra.mxu1 %v1182_v6  ;;  %v792_v6 = vld [vmem:[#allocation4 + $0x170] sm:$0xff] }
 0x2c3   :  { %1190 = vmatprep.subr.bf16.mxu1 %v1306_v50  ;;  %v1224_v10 = vpack.c.bf16 %v792_v6, %v791_v5 }
 0x390   :  { %v444_v12 = vpop.f32.mrb[4].mxu1 }
 0x391   :  { %v1404_v14 = vadd.f32 %v920_v9, %v444_v12  ;;  %v1046_v15 = vpop.f32.mrb[5].mxu1  ;;  %v794_v12 = vld [vmem:[#allocation4 + $0x180] sm:$0xff] }
 0x392   :  { %v694_v15 = vld [vmem:[#allocation4 + $0xa8] sm:$0x1] }
 0x393   :  { %v551_v19 = vrot.slane %v1404_v14, 1  ;;  %1056 = vmatmul.mubr.msk.f32.vlgmr.msra.gmra.mrb[8].mxu0 %vm146_vm1, %v1404_v14 }
 0x394   :  { %1186 = vmatpush3.bf16.msra.mxu0 %v1185_v13  ;;  %1077 = vmatprep.mubr.msk.f32.mxu0 %vm1307_vm6, %v1308_v51 }
 0x395   :  { %1067 = vmatmul.mubr.msk.f32.vlgmr.msra.gmra.mrb[6].mxu1 %vm146_vm1, %v551_v19  ;;  %1187 = vmatprep.subr.bf16.mxu0 %v1306_v50  ;;  %v795_v19 = vld [vmem:[#allocation4 + $0x188] sm:$0xff] }
 0x396   :  { %1192 = vmatpush3.bf16.msra.mxu1 %v1191_v18  ;;  %1112 = vmatprep.mubr.msk.f32.mxu1 %vm1307_vm6, %v1308_v51  ;;  %v1227_v18 = vpack.c.bf16 %v794_v12, %v793_v11 }
 0x397   :  { %1193 = vmatprep.subr.bf16.mxu1 %v1306_v50 }
 0x398   :  { %1189 = vmatpush3.bf16.msra.mxu0 %v1188_v22 }
 0x399   :  { %1214 = vmatprep.subr.bf16.mxu0 %v1306_v50 }
 0x39a   :  { %1195 = vmatpush3.bf16.msra.mxu1 %v1194_v23  ;;  %v1230_v23 = vpack.c.bf16 %v796_v20, %v795_v19 }
 0x39b   :  { %1078 = vmatmul.mubr.msk.f32.vlgmr.msra.gmra.mrb[10].mxu0 %vm146_vm1, %v1404_v14  ;;  %1196 = vmatprep.subr.bf16.mxu1 %v1306_v50 }
 0x39c   :  { %1147 = vmatprep.mubr.msk.f32.mxu0 %vm1307_vm6, %v1308_v51  ;;  %v459_v51 = vrot.slane %v458_v49, 2  ;;  %1216 = vmatpush3.bf16.msra.mxu0 %v1215_v57 }
 0x39d   :  { %1217 = vmatprep.subr.bf16.mxu0 %v1306_v50 }
 0x39e   :  { %1198 = vmatpush3.bf16.msra.mxu1 %v1197_v26  ;;  %v460_v52 = vadd.f32 %v459_v51, %v458_v49  ;;  %v1233_v26 = vpack.c.bf16 %v798_v25, %v797_v24 }
 0x39f   :  { %1199 = vmatprep.subr.bf16.mxu1 %v1306_v50 }
 0x3a0   :  { %v461_v53 = vrot.slane %v460_v52, 1  ;;  %1219 = vmatpush3.bf16.msra.mxu0 %v1218_v60 }
 0x3a1   :  { %1220 = vmatprep.subr.bf16.mxu0 %v1306_v50 }
 0x3a2   :  { %1201 = vmatpush3.bf16.msra.mxu1 %v1200_v29  ;;  %v462_v59 = vadd.f32 %v461_v53, %v460_v52  ;;  %v1236_v29 = vpack.c.bf16 %v800_v28, %v799_v27 }
 0x3a3   :  { %1202 = vmatprep.subr.bf16.mxu1 %v1306_v50 }
 0x3a4   :  { %1222 = vmatpush3.bf16.msra.mxu0 %v1221_v3 }
 0x3a5   :  { %1223 = vmatprep.subr.bf16.mxu0 %v1306_v50 }
 0x3a6   :  { %1204 = vmatpush3.bf16.msra.mxu1 %v1203_v32 }
 0x3a7   :  { %1205 = vmatprep.subr.bf16.mxu1 %v1306_v50 }
 0x3a8   :  { %1225 = vmatpush3.bf16.msra.mxu0 %v1224_v10 }
 0x3a9   :  { %1226 = vmatprep.subr.bf16.mxu0 %v1306_v50 }
 0x3aa   :  { %1207 = vmatpush3.bf16.msra.mxu1 %v1206_v35  ;;  %v801_v35 = vld [vmem:[#allocation4 + $0x1b8] sm:$0x1] }
 0x3ab   :  { %1208 = vmatprep.subr.bf16.mxu1 %v1306_v50 }
 0x3ac   :  { %1228 = vmatpush3.bf16.msra.mxu0 %v1227_v18 }
 0x3ad   :  { %1229 = vmatprep.subr.bf16.mxu0 %v1306_v50 }
 0x3ae   :  { %1210 = vmatpush3.bf16.msra.mxu1 %v1209_v38 }
 0x3af   :  { %1211 = vmatprep.subr.bf16.mxu1 %v1306_v50 }
 0x3b0   :  { %1231 = vmatpush3.bf16.msra.mxu0 %v1230_v23 }
 0x3b1   :  { %1232 = vmatprep.subr.bf16.mxu0 %v1306_v50 }
 0x3b2   :  { %1213 = vmatpush3.bf16.msra.mxu1 %v1212_v41 }
 0x3b4   :  { %1234 = vmatpush3.bf16.msra.mxu0 %v1233_v26 }
 0x3b5   :  { %1235 = vmatprep.subr.bf16.mxu0 %v1306_v50 }
 0x3b8   :  { %1237 = vmatpush3.bf16.msra.mxu0 %v1236_v29 }
 0x466   :  { %v536_v63 = vpop.f32.mrb[8].mxu0 }
 0x467   :  { %v540_v1 = vadd.f32 %v536_v63, %v462_v59  ;;  %v1057_v2 = vpop.f32.mrb[9].mxu0 }
 0x468   :  { %v620_v4 = vpop.f32.mrb[6].mxu1 }
 0x469   :  { %v1068_v7 = vpop.f32.mrb[7].mxu1  ;;  %v542_v8 = vadd.f32 %v541_v0, %v540_v1 }
 0x46b   :  { %v873_v9 = vrot.slane %v542_v8, 7 }
 0x46d   :  { %874 = vrot.lane.b32.xlu0 %v873_v9, %s1309_s0 }
 0x46e   :  { %v690_v13 = vpop.f32.mrb[10].mxu0 }
 0x46f   :  { %v691_v16 = vadd.f32 %v690_v13, %v620_v4  ;;  %v1079_v17 = vpop.f32.mrb[11].mxu0 }
 0x471   :  { %v695_v21 = vadd.f32 %v694_v15, %v691_v16 }
 0x473   :  { %v696_v22 = vmax.f32 %v695_v21, 0.0 }
 0x475   :  { %1113 = vmatmul.mubr.f32.vlgmr.msra.gmra.mrb[8].mxu1 %v696_v22 }
 0x4df   :  { %v875_v40 = vpop.permute.xlu0 %874 }
 0x4e0   :  { %v882_v50 = vsel %vm146_vm1, %v1404_v14, %v875_v40 }
 0x548   :  { %v780_v31 = vpop.f32.mrb[8].mxu1 }
 0x549   :  { %v781_v32 = vadd.f32 %v780_v31, %v713_v30  ;;  %v1114_v33 = vpop.f32.mrb[9].mxu1 }
 0x54b   :  { %v784_v34 = vmax.f32 %v781_v32, 0.0 }
 0x54d   :  { %1148 = vmatmul.mubr.f32.vlgmr.msra.gmra.mrb[12].mxu0 %v784_v34 }
 0x620   :  { %v868_v36 = vpop.f32.mrb[12].mxu0 }
 0x621   :  { %v869_v37 = vadd.f32 %v868_v36, %v801_v35  ;;  %v1149_v38 = vpop.f32.mrb[13].mxu0 }
 0x623   :  { %v878_v39 = vrot.slane %v869_v37, 7 }
 0x625   :  { %879 = vrot.lane.b32.xlu0 %v878_v39, %s1310_s23 }
 0x697   :  { %v880_v41 = vpop.permute.xlu0 %879 }
 0x698   :  { %v884_v42 = vsel %vm883_vm9, %v882_v50, %v880_v41 }
 0x699   :  { %v886_v43 = vsel %vm885_vm10, %v884_v42, 0.0 }
 0x69a   :  { %887 = vst [vmem:[#allocation7 - $0x1] sm:$0x2] %v886_v43 }
 0x69b   :  { %1288 = shalt.err (!%p1285_p12)
}
 0x69c   :  { %s1289_s30 = scalar_lea.hbm %s1456_s5, 16 }
 0x69d   :  { %p1290_p13 = scmp.ne.s32.totalorder %s1456_s5, %s1289_s30  ;;  %p1293_p0 = scmp.lt.u32.totalorder %s1289_s30, %s1456_s5 }
 0x69f   :  { %p1295_p1 = pnand %p1293_p0, %p1290_p13 }
 0x6a1   :  { %1298 = shalt.err (!%p1295_p1)
}
 0x6a2   :  { %897 = dma.vmem_to_hbm [thread:$0]  %s895_s25, 16, %s1456_s5, [#allocation6]  }
 0x6a3   :  { %1301 = dma.done.wait [#allocation6], 16  }
 0x6a4   :  { %1302 = vsyncadd [#allocation6], 4294967280 }
 0x6a5   :  { %901 = vsyncpa [#allocation5], 1 }
 0x6a6   :  { %902 = vsyncpa [#allocation6], 1 }

</bundles_post_ra>
